<compile_context>
chip_gen: v7x
topology: tpu7x:2x2x1
jax: 0.10.0
libtpu: 0.0.40
codegen_flags: <defaults>
</compile_context>

<pallas_src>
from functools import partial

import jax
import jax.numpy as jnp
from jax.experimental import pallas as pl
from jax.experimental.pallas import tpu as pltpu

NUM_LAYERS = 5
F_PAD = 16            # all feature dims (10, 10, 8, 6, 4, 2) zero-padded to 16
BIAS_ROW = F_PAD - 1  # constant-1.0 activation row used to fold the bias in
OUT_PAD = 8           # f32 sublane minimum; only first OUT_F rows are real
OUT_F = 2             # real width of the final Linear output
MAX_TB = 8192         # max batch-tile width (lanes)
SMALL_BATCH_MIN = 1024  # below this, use the fused XLA chain instead of Pallas


def _round_up(v, m):
    return (v + m - 1) // m * m


def mlp_kernel(x_ref, w_ref, o_ref):
    """One batch tile of the whole 5-layer MLP (bias folded into the weights).

    x_ref: (F_PAD, TB)                  activations, batch on the lane axis,
                                        row BIAS_ROW is constant 1.0
    w_ref: (NUM_LAYERS, F_PAD, F_PAD)   packed transposed (out, in) weights,
                                        column BIAS_ROW holds the bias,
                                        (BIAS_ROW, BIAS_ROW)=1 for hidden layers
    o_ref: (OUT_PAD, TB)                lane-dense output tile (rows >= OUT_F are 0)
    """
    h = x_ref[...]
    for l in range(NUM_LAYERS):                      # static unroll, static slices
        h = jnp.dot(w_ref[l], h, preferred_element_type=jnp.float32)
        if l < NUM_LAYERS - 1:
            h = jnp.maximum(h, 0.0)                  # ReLU; ones row stays 1.0
    o_ref[...] = h[:OUT_PAD]


@partial(jax.jit, static_argnames=("use_pallas",))
def space_ship_forward(x, w_packed, use_pallas=None):
    """x: (B, enemyNum+1, 2) -> (B, 2), matching Space_ship.forward."""
    B = x.shape[0]
    x_flat = x.reshape(B, -1).astype(jnp.float32)    # nn.Flatten()
    F = x_flat.shape[1]
    assert F <= BIAS_ROW, (F, BIAS_ROW)

    if use_pallas is None:
        use_pallas = B >= SMALL_BATCH_MIN

    if not use_pallas:
        # Fused XLA chain fallback; same packed (bias-folded) weights.
        xp = (jnp.zeros((B, F_PAD), jnp.float32)
              .at[:, :F].set(x_flat)
              .at[:, BIAS_ROW].set(1.0))
        h = xp
        for l in range(NUM_LAYERS):
            h = h @ w_packed[l].T
            if l < NUM_LAYERS - 1:
                h = jnp.maximum(h, 0.0)
        return h[:, :OUT_F]

    # --- Pallas path: batch on the lane axis, 1-D grid over batch tiles. ---
    B_pad0 = _round_up(B, 128)
    TB = min(MAX_TB, B_pad0)
    # Keep >= 2 tiles when possible so ("parallel",) can use both v7x TCs.
    TB = min(TB, max(128, _round_up(pl.cdiv(B_pad0, 2), 128)))
    B_pad = _round_up(B, TB)

    # Single fused pad/transpose pass (under jit); row BIAS_ROW is constant 1.0.
    x_t = (jnp.zeros((F_PAD, B_pad), jnp.float32)
           .at[:F, :B].set(x_flat.T)
           .at[BIAS_ROW, :].set(1.0))

    out = pl.pallas_call(
        mlp_kernel,
        out_shape=jax.ShapeDtypeStruct((OUT_PAD, B_pad), jnp.float32),
        grid_spec=pltpu.PrefetchScalarGridSpec(
            num_scalar_prefetch=0,
            grid=(B_pad // TB,),
            in_specs=[
                pl.BlockSpec((F_PAD, TB), lambda i: (0, i)),                    # x tile
                pl.BlockSpec((NUM_LAYERS, F_PAD, F_PAD), lambda i: (0, 0, 0)),  # weights (resident)
            ],
            out_specs=pl.BlockSpec((OUT_PAD, TB), lambda i: (0, i)),
        ),
        compiler_params=pltpu.CompilerParams(
            dimension_semantics=("parallel",)),      # megacore-shard batch tiles (v7x)
    )(x_t, w_packed)

    # Un-pad: real logits are the first OUT_F rows / first B columns.
    return out[:OUT_F, :B].T


def make_params(key, enemy_num=4, consider_gain=False,
                hidden_layer=((5,), (4,), (3,), (2,))):
    """PyTorch-style uniform(-1/sqrt(fan_in), 1/sqrt(fan_in)) init; W is (in, out)."""
    in_f = (enemy_num + 1) * 2 if not consider_gain else (enemy_num + 2) * 2
    dims = [in_f] + [h[0] * 2 for h in hidden_layer] + [2]
    params = []
    for i in range(len(dims) - 1):
        fan_in, fan_out = dims[i], dims[i + 1]
        key, kw, kb = jax.random.split(key, 3)
        bound = 1.0 / float(jnp.sqrt(jnp.float32(fan_in)))
        w = jax.random.uniform(kw, (fan_in, fan_out), jnp.float32, -bound, bound)
        b = jax.random.uniform(kb, (fan_out,), jnp.float32, -bound, bound)
        params.append((w, b))
    return params


def pack_params(params):
    """Pack per-layer (W[in,out], b[out]) into one zero-padded, transposed,
    bias-folded tensor: w_packed[l] is (out_pad, in_pad) with the bias in
    column BIAS_ROW; hidden layers pass the constant-1 row through."""
    assert len(params) == NUM_LAYERS
    w_packed = jnp.zeros((NUM_LAYERS, F_PAD, F_PAD), jnp.float32)
    for l, (w, b) in enumerate(params):
        fi, fo = w.shape
        assert fi <= BIAS_ROW and fo <= BIAS_ROW, (fi, fo)
        w_packed = w_packed.at[l, :fo, :fi].set(w.T)        # store as (out, in)
        w_packed = w_packed.at[l, :fo, BIAS_ROW].set(b)      # folded bias column
        if l < NUM_LAYERS - 1:
            w_packed = w_packed.at[l, BIAS_ROW, BIAS_ROW].set(1.0)  # keep ones row alive
    return w_packed


def reference_forward(x, params):
    """Pure-JAX reference (unpadded, explicit bias) for correctness checks."""
    h = x.reshape(x.shape[0], -1).astype(jnp.float32)
    for i, (w, b) in enumerate(params):
        h = h @ w + b
        if i < len(params) - 1:
            h = jnp.maximum(h, 0.0)
    return h


if __name__ == "__main__":
    key = jax.random.PRNGKey(0)
    k_params, k_x1, k_x2 = jax.random.split(key, 3)

    params = make_params(k_params, enemy_num=4, consider_gain=False,
                         hidden_layer=((5,), (4,), (3,), (2,)))
    w_packed = pack_params(params)

    # (batch, enemyNum+1, 2): 4 enemies + the ship, 2 coords each.
    x_small = jax.random.normal(k_x1, (8, 5, 2), dtype=jnp.float32)

    # Force the Pallas path even at tiny batch to validate the kernel itself.
    out_small = space_ship_forward(x_small, w_packed, use_pallas=True)
    jax.block_until_ready(out_small)
    ref_small = reference_forward(x_small, params)
    assert out_small.shape == (8, 2), out_small.shape
    assert jnp.allclose(out_small, ref_small, atol=1e-4, rtol=1e-4), "mismatch (B=8, pallas)"

    # Auto path at tiny batch -> fused XLA fallback; must match too.
    out_fb = space_ship_forward(x_small, w_packed)
    jax.block_until_ready(out_fb)
    assert jnp.allclose(out_fb, ref_small, atol=1e-4, rtol=1e-4), "mismatch (B=8, fallback)"

    # Larger batch: exercises batch padding, the >=2-tile clamp, and a
    # multi-step ("parallel") grid of 2 batch tiles.
    x_big = jax.random.normal(k_x2, (300, 5, 2), dtype=jnp.float32)
    out_big = space_ship_forward(x_big, w_packed, use_pallas=True)
    jax.block_until_ready(out_big)
    ref_big = reference_forward(x_big, params)
    assert out_big.shape == (300, 2), out_big.shape
    assert jnp.allclose(out_big, ref_big, atol=1e-4, rtol=1e-4), "mismatch (B=300)"

    print("KERNEL_OK")
</pallas_src>

<mosaic_0001>
module attributes {stable_mosaic.version = 11 : i64} {
  func.func @mlp_kernel(%arg0: i32, %arg1: memref<16x128xf32, #tpu.memory_space<vmem>>, %arg2: memref<5x16x16xf32, #tpu.memory_space<vmem>>, %arg3: memref<8x128xf32, #tpu.memory_space<vmem>>) attributes {dimension_semantics = [#tpu.dimension_semantics<parallel>], iteration_bounds = array<i64: 1>, scalar_prefetch = 0 : i64, scratch_operands = 0 : i64, tpu.core_type = #tpu.core_type<tc>, window_params = [{transform_indices = @transform_0, window_bounds = array<i64: 16, 128>}, {pipeline_mode = #tpu.pipeline_mode<synchronous>, transform_indices = @transform_1, window_bounds = array<i64: 5, 16, 16>}, {transform_indices = @transform_2, window_bounds = array<i64: 8, 128>}]} {
    %c0 = arith.constant 0 : index
    %c0_0 = arith.constant 0 : index
    %0 = vector.load %arg1[%c0, %c0_0] : memref<16x128xf32, #tpu.memory_space<vmem>>, vector<16x128xf32>
    %c0_1 = arith.constant 0 : index
    %c0_2 = arith.constant 0 : index
    %c0_3 = arith.constant 0 : index
    %1 = vector.load %arg2[%c0_1, %c0_2, %c0_3] : memref<5x16x16xf32, #tpu.memory_space<vmem>>, vector<1x16x16xf32>
    %2 = vector.shape_cast %1 : vector<1x16x16xf32> to vector<16x16xf32>
    %cst = arith.constant dense<0.000000e+00> : vector<16x128xf32>
    %3 = tpu.matmul %2, %0, %cst {dimension_numbers = #tpu.dot_dimension_numbers<[1], [0], [0], [1], [0, 0, 1, 1], [], []>} : vector<16x16xf32>, vector<16x128xf32>, vector<16x128xf32> -> vector<16x128xf32>
    %cst_4 = arith.constant 0.000000e+00 : f32
    %4 = vector.broadcast %cst_4 : f32 to vector<16x128xf32>
    %5 = arith.maximumf %3, %4 : vector<16x128xf32>
    %c1 = arith.constant 1 : index
    %c0_5 = arith.constant 0 : index
    %c0_6 = arith.constant 0 : index
    %6 = vector.load %arg2[%c1, %c0_5, %c0_6] : memref<5x16x16xf32, #tpu.memory_space<vmem>>, vector<1x16x16xf32>
    %7 = vector.shape_cast %6 : vector<1x16x16xf32> to vector<16x16xf32>
    %cst_7 = arith.constant dense<0.000000e+00> : vector<16x128xf32>
    %8 = tpu.matmul %7, %5, %cst_7 {dimension_numbers = #tpu.dot_dimension_numbers<[1], [0], [0], [1], [0, 0, 1, 1], [], []>} : vector<16x16xf32>, vector<16x128xf32>, vector<16x128xf32> -> vector<16x128xf32>
    %cst_8 = arith.constant 0.000000e+00 : f32
    %9 = vector.broadcast %cst_8 : f32 to vector<16x128xf32>
    %10 = arith.maximumf %8, %9 : vector<16x128xf32>
    %c2 = arith.constant 2 : index
    %c0_9 = arith.constant 0 : index
    %c0_10 = arith.constant 0 : index
    %11 = vector.load %arg2[%c2, %c0_9, %c0_10] : memref<5x16x16xf32, #tpu.memory_space<vmem>>, vector<1x16x16xf32>
    %12 = vector.shape_cast %11 : vector<1x16x16xf32> to vector<16x16xf32>
    %cst_11 = arith.constant dense<0.000000e+00> : vector<16x128xf32>
    %13 = tpu.matmul %12, %10, %cst_11 {dimension_numbers = #tpu.dot_dimension_numbers<[1], [0], [0], [1], [0, 0, 1, 1], [], []>} : vector<16x16xf32>, vector<16x128xf32>, vector<16x128xf32> -> vector<16x128xf32>
    %cst_12 = arith.constant 0.000000e+00 : f32
    %14 = vector.broadcast %cst_12 : f32 to vector<16x128xf32>
    %15 = arith.maximumf %13, %14 : vector<16x128xf32>
    %c3 = arith.constant 3 : index
    %c0_13 = arith.constant 0 : index
    %c0_14 = arith.constant 0 : index
    %16 = vector.load %arg2[%c3, %c0_13, %c0_14] : memref<5x16x16xf32, #tpu.memory_space<vmem>>, vector<1x16x16xf32>
    %17 = vector.shape_cast %16 : vector<1x16x16xf32> to vector<16x16xf32>
    %cst_15 = arith.constant dense<0.000000e+00> : vector<16x128xf32>
    %18 = tpu.matmul %17, %15, %cst_15 {dimension_numbers = #tpu.dot_dimension_numbers<[1], [0], [0], [1], [0, 0, 1, 1], [], []>} : vector<16x16xf32>, vector<16x128xf32>, vector<16x128xf32> -> vector<16x128xf32>
    %cst_16 = arith.constant 0.000000e+00 : f32
    %19 = vector.broadcast %cst_16 : f32 to vector<16x128xf32>
    %20 = arith.maximumf %18, %19 : vector<16x128xf32>
    %c4 = arith.constant 4 : index
    %c0_17 = arith.constant 0 : index
    %c0_18 = arith.constant 0 : index
    %21 = vector.load %arg2[%c4, %c0_17, %c0_18] : memref<5x16x16xf32, #tpu.memory_space<vmem>>, vector<1x16x16xf32>
    %22 = vector.shape_cast %21 : vector<1x16x16xf32> to vector<16x16xf32>
    %cst_19 = arith.constant dense<0.000000e+00> : vector<16x128xf32>
    %23 = tpu.matmul %22, %20, %cst_19 {dimension_numbers = #tpu.dot_dimension_numbers<[1], [0], [0], [1], [0, 0, 1, 1], [], []>} : vector<16x16xf32>, vector<16x128xf32>, vector<16x128xf32> -> vector<16x128xf32>
    %24 = vector.extract_strided_slice %23 {offsets = [0, 0], sizes = [8, 128], strides = [1, 1]} : vector<16x128xf32> to vector<8x128xf32>
    %c0_20 = arith.constant 0 : index
    %c0_21 = arith.constant 0 : index
    %25 = vector.load %arg3[%c0_20, %c0_21] : memref<8x128xf32, #tpu.memory_space<vmem>>, vector<8x128xf32>
    tpu.vector_store %arg3[%c0_20, %c0_21], %24 {strides = array<i32>} : memref<8x128xf32, #tpu.memory_space<vmem>>, vector<8x128xf32>,
    return
  }
  func.func @transform_0(%arg0: i32) -> (i32, i32) {
    %c0_i32 = arith.constant 0 : i32
    %c0_i32_0 = arith.constant 0 : i32
    return %c0_i32, %arg0 : i32, i32
  }
  func.func @transform_1(%arg0: i32) -> (i32, i32, i32) {
    %c0_i32 = arith.constant 0 : i32
    %c0_i32_0 = arith.constant 0 : i32
    %c0_i32_1 = arith.constant 0 : i32
    %c0_i32_2 = arith.constant 0 : i32
    return %c0_i32, %c0_i32_0, %c0_i32_1 : i32, i32, i32
  }
  func.func @transform_2(%arg0: i32) -> (i32, i32) {
    %c0_i32 = arith.constant 0 : i32
    %c0_i32_0 = arith.constant 0 : i32
    return %c0_i32, %arg0 : i32, i32
  }
}

</mosaic_0001>

<bundles_post_ra>
// kernel: space_ship_forward.1
= control target key start
LH: loop header
LB: loop body
LE: loop exit
PB: predicated region body
PF: predicated region fallthrough
CT: control target
= control target key end

     0   :  { %7 = vsyncpa [#allocation3], 0  ;;  %s572_s9 = smov [#allocation2]   ;;  %s621_s0 = inlined_call_operand.vmem [shape: f32[16,128], index: 0, kind: input, shape index: {}]   ;;  %s622_s1 = inlined_call_operand.hbm [shape: f32[5,16,16], index: 1, kind: input, shape index: {}]   ;;  %s623_s2 = inlined_call_operand.vmem [shape: f32[8,128], index: 2, kind: output, shape index: {}]  }
   0x1   :  { %s15_s10 = sshll.u32 %s572_s9, 4  ;;  %s548_s13 = scalar_lea.hbm %s622_s1, 1280  ;;  %s16_s10 = int_to_ptr.vmem [resolvable:$true] %s15_s10 }
   0x2   :  { %p549_p0 = scmp.ne.s32.totalorder %s622_s1, %s548_s13  ;;  %p552_p1 = scmp.lt.u32.totalorder %s548_s13, %s622_s1 }
   0x4   :  { %p554_p2 = pnand %p552_p1, %p549_p0 }
   0x6   :  { %557 = shalt.err (!%p554_p2)
}
   0x7   :  { %s558_s18 = scalar_lea.vmem %s16_s10, 1280  ;;  %p563_p4 = scmp.lt.s32.totalorder %s16_s10, %s16_s10 }
   0x8   :  { %p559_p3 = scmp.ne.s32.totalorder %s16_s10, %s558_s18  ;;  %p564_p5 = scmp.lt.s32.totalorder %s558_s18, %s558_s18 }
   0xa   :  { %p565_p6 = por %p564_p5, %p563_p4 }
   0xc   :  { %p566_p7 = pnand %p565_p6, %p559_p3 }
   0xe   :  { %569 = shalt.err (!%p566_p7)
}
   0xf   :  { %s573_s19 = smov 128   ;;  %s574_s20 = smov 8  }
  0x10   :  { %21 = dma.hbm_to_vmem [thread:$0]  %s622_s1, 1280, %s16_s10, [#allocation3], %s573_s19, %s573_s19, %s574_s20  }
  0x11   :  { %570 = dma.done.wait [#allocation3], 1280  }
  0x12   :  { %571 = vsyncadd [#allocation3], 4294966016  ;;  %vm29_vm0 = vcmask 130048   ;;  %v25_v0 = vld [vmem:[%s621_s0] sm:$0xff]  ;;  %v26_v1 = vld [vmem:[%s621_s0 + $0x8] sm:$0xff] }
  0x13   :  { %v27_v2 = vld [vmem:[#allocation2] sm:$0xff]  ;;  %v525_v3 = vpack.c.bf16 %v26_v1, %v25_v0  ;;  %v28_v4 = vld [vmem:[#allocation2 + $0x8] sm:$0xff]  ;;  %v114_v5 = vld [vmem:[#allocation2 + $0x10] sm:$0xff] }
  0x14   :  { %494 = vmatprep.mubr.msk.f32.mxu0 %vm29_vm0, %v27_v2  ;;  %501 = vmatprep.mubr.msk.f32.mxu1 %vm29_vm0, %v114_v5  ;;  %v115_v11 = vld [vmem:[#allocation2 + $0x18] sm:$0xff]  ;;  %v200_v12 = vld [vmem:[#allocation2 + $0x20] sm:$0xff]  ;;  %v201_v18 = vld [vmem:[#allocation2 + $0x28] sm:$0xff] }
  0x15   :  { %526 = vmatprep.subr.bf16.mxu0 %v525_v3  ;;  %v286_v19 = vld [vmem:[#allocation2 + $0x30] sm:$0xff]  ;;  %v287_v25 = vld [vmem:[#allocation2 + $0x38] sm:$0xff]  ;;  %v372_v26 = vld [vmem:[#allocation2 + $0x40] sm:$0xff] }
  0x16   :  { %528 = vmatpush3.bf16.msra.mxu0 %v525_v3  ;;  %v373_v32 = vld [vmem:[#allocation2 + $0x48] sm:$0xff] }
  0x19   :  { %495 = vmatmul.mubr.msk.f32.vlgmr.msra.gmra.mrb[0].mxu0 %vm29_vm0, %v28_v4 }
  0x1a   :  { %508 = vmatprep.mubr.msk.f32.mxu0 %vm29_vm0, %v200_v12 }
  0xec   :  { %v496_v6 = vpop.f32.mrb[0].mxu0 }
  0xed   :  { %v112_v7 = vmax.f32 %v496_v6, 0.0  ;;  %v102_v8 = vpop.f32.mrb[1].mxu0 }
  0xee   :  { %v111_v9 = vmax.f32 %v102_v8, 0.0 }
  0xf0   :  { %v529_v10 = vpack.c.bf16 %v112_v7, %v111_v9 }
  0xf2   :  { %530 = vmatprep.subr.bf16.mxu1 %v529_v10 }
  0xf3   :  { %532 = vmatpush3.bf16.msra.mxu1 %v529_v10 }
  0xf6   :  { %502 = vmatmul.mubr.msk.f32.vlgmr.msra.gmra.mrb[0].mxu1 %vm29_vm0, %v115_v11 }
  0xf7   :  { %515 = vmatprep.mubr.msk.f32.mxu1 %vm29_vm0, %v286_v19 }
 0x1c9   :  { %v503_v13 = vpop.f32.mrb[0].mxu1 }
 0x1ca   :  { %v198_v14 = vmax.f32 %v503_v13, 0.0  ;;  %v188_v15 = vpop.f32.mrb[1].mxu1 }
 0x1cb   :  { %v197_v16 = vmax.f32 %v188_v15, 0.0 }
 0x1cd   :  { %v533_v17 = vpack.c.bf16 %v198_v14, %v197_v16 }
 0x1cf   :  { %534 = vmatprep.subr.bf16.mxu0 %v533_v17 }
 0x1d0   :  { %536 = vmatpush3.bf16.msra.mxu0 %v533_v17 }
 0x1d3   :  { %509 = vmatmul.mubr.msk.f32.vlgmr.msra.gmra.mrb[2].mxu0 %vm29_vm0, %v201_v18 }
 0x1d4   :  { %522 = vmatprep.mubr.msk.f32.mxu0 %vm29_vm0, %v372_v26 }
 0x2a6   :  { %v510_v20 = vpop.f32.mrb[2].mxu0 }
 0x2a7   :  { %v284_v21 = vmax.f32 %v510_v20, 0.0  ;;  %v274_v22 = vpop.f32.mrb[3].mxu0 }
 0x2a8   :  { %v283_v23 = vmax.f32 %v274_v22, 0.0 }
 0x2aa   :  { %v537_v24 = vpack.c.bf16 %v284_v21, %v283_v23 }
 0x2ac   :  { %538 = vmatprep.subr.bf16.mxu1 %v537_v24 }
 0x2ad   :  { %540 = vmatpush3.bf16.msra.mxu1 %v537_v24 }
 0x2b0   :  { %516 = vmatmul.mubr.msk.f32.vlgmr.msra.gmra.mrb[2].mxu1 %vm29_vm0, %v287_v25 }
 0x383   :  { %v517_v27 = vpop.f32.mrb[2].mxu1 }
 0x384   :  { %v370_v28 = vmax.f32 %v517_v27, 0.0  ;;  %v360_v29 = vpop.f32.mrb[3].mxu1 }
 0x385   :  { %v369_v30 = vmax.f32 %v360_v29, 0.0 }
 0x387   :  { %v541_v31 = vpack.c.bf16 %v370_v28, %v369_v30 }
 0x389   :  { %542 = vmatprep.subr.bf16.mxu0 %v541_v31 }
 0x38a   :  { %544 = vmatpush3.bf16.msra.mxu0 %v541_v31 }
 0x38d   :  { %523 = vmatmul.mubr.msk.f32.vlgmr.msra.gmra.mrb[4].mxu0 %vm29_vm0, %v373_v32 }
 0x460   :  { %v524_v33 = vpop.f32.mrb[4].mxu0 }
 0x461   :  { %v446_v34 = vpop.f32.mrb[5].mxu0 }
 0x462   :  { %454 = vst [vmem:[%s623_s2] sm:$0xff] %v446_v34 }
 0x463   :  { %459 = vsyncpa [#allocation3], 1 }

</bundles_post_ra>
